<compile_context>
chip_gen: v6e
topology: v6e:2x2x1
jax: 0.10.0
libtpu: 0.0.40
codegen_flags: <defaults>
</compile_context>

<pallas_src>
import functools
import math

import jax
import jax.numpy as jnp
from jax.experimental import pallas as pl
from jax.experimental.pallas import tpu as pltpu


def normalize_kernel(scale_ref, bias_ref, x_ref, o_ref):
    # scale_ref / bias_ref: (rb, 1) f32, resident in VMEM (constant index_map).
    # x_ref / o_ref:        (rb, HW) tile of the flattened (N*C, H*W) tensor.
    x = x_ref[...].astype(jnp.float32)
    o_ref[...] = (x * scale_ref[...] + bias_ref[...]).astype(o_ref.dtype)


@functools.partial(jax.jit, static_argnames=("target_block_bytes",))
def normalize(x, mean, std, *, target_block_bytes=4 * 1024 * 1024):
    """(x - mean[None,:,None,None]) / std[None,:,None,None] for NCHW x."""
    N, C, H, W = x.shape
    assert mean.shape == (C,) and std.shape == (C,)

    # Hoist the divide: per-channel affine params (C elements, negligible).
    scale = (1.0 / std).astype(jnp.float32)        # 1 / std
    bias = (-mean / std).astype(jnp.float32)       # -mean / std

    R = N * C
    HW = H * W
    itemsize = jnp.dtype(x.dtype).itemsize

    # Pure view: NCHW -> (N*C, H*W). No padding / extra HBM passes; a ragged
    # lane tail (HW % 128 != 0) is handled by masked stores inside the kernel.
    x2 = x.reshape(R, HW)

    # Row-block size:
    #  * multiple of the dtype sublane tile (8 f32 / 16 bf16 / 32 int8),
    #  * multiple of C so one resident (rb, 1) scale/bias column is valid for
    #    every block (every block start is a multiple of rb, hence of C),
    #  * >= 2 blocks whenever possible so "parallel" sharding uses both v7x TCs,
    #  * ~target_block_bytes per block to amortize the ~0.35 us/step overhead.
    sub = max(8, 32 // itemsize)                   # sublane tile for this dtype
    unit = math.lcm(C, sub)
    row_bytes = HW * itemsize
    rb_target = max(1, target_block_bytes // row_bytes)
    if R >= 2 * unit:
        rb = max(unit, min(rb_target, R // 2))
        rb = (rb // unit) * unit                   # align to lcm(C, sublane tile)
    else:
        rb = R                                     # single block (== full dim, legal)
    grid_r = pl.cdiv(R, rb)

    # One block's worth of per-row affine params, reused by every grid step.
    reps = rb // C
    scale_rows = jnp.tile(scale, reps).reshape(rb, 1)
    bias_rows = jnp.tile(bias, reps).reshape(rb, 1)

    # Deterministic VMEM budget: in + out double-buffered + tiny resident params.
    block_bytes = rb * HW * itemsize
    params_bytes = 4 * ((rb + 7) // 8) * 8 * 128 * 4   # 2 arrays x 2 bufs, lane-padded
    vmem_needed = 4 * block_bytes + params_bytes + (2 << 20)
    vmem_limit = int(max(vmem_needed, 32 * 1024 * 1024))

    out2 = pl.pallas_call(
        normalize_kernel,
        out_shape=jax.ShapeDtypeStruct((R, HW), x.dtype),
        grid=(grid_r,),
        in_specs=[
            pl.BlockSpec((rb, 1), lambda r: (0, 0)),    # scale: resident, one fetch
            pl.BlockSpec((rb, 1), lambda r: (0, 0)),    # bias:  resident, one fetch
            pl.BlockSpec((rb, HW), lambda r: (r, 0)),   # x tile (streamed)
        ],
        out_specs=pl.BlockSpec((rb, HW), lambda r: (r, 0)),
        compiler_params=pltpu.CompilerParams(
            dimension_semantics=("parallel",),
            vmem_limit_bytes=vmem_limit,
        ),
        cost_estimate=pl.CostEstimate(
            flops=2 * R * HW,
            transcendentals=0,
            bytes_accessed=2 * R * HW * itemsize + 2 * rb * 4,
        ),
    )(scale_rows, bias_rows, x2)

    return out2.reshape(N, C, H, W)


if __name__ == "__main__":
    # CIFAR-10 normalization constants (module implies C=3).
    mean = jnp.array([0.4914, 0.4822, 0.4465], dtype=jnp.float32)
    std = jnp.array([0.2471, 0.2435, 0.2616], dtype=jnp.float32)

    key = jax.random.PRNGKey(0)
    x = jax.random.uniform(key, (2, 3, 16, 16), dtype=jnp.float32)

    out = jax.block_until_ready(normalize(x, mean, std))
    ref = (x - mean.reshape(1, 3, 1, 1)) / std.reshape(1, 3, 1, 1)
    assert out.shape == x.shape and out.dtype == x.dtype
    assert jnp.allclose(out, ref, rtol=1e-5, atol=1e-5)

    # Edge-case check: multi-block grid with a partial last row block and a
    # ragged lane tail (H*W = 35, not a multiple of 128; R = 60, rb = 24).
    x2 = jax.random.normal(jax.random.PRNGKey(1), (20, 3, 5, 7), dtype=jnp.float32)
    out2 = jax.block_until_ready(normalize(x2, mean, std))
    ref2 = (x2 - mean.reshape(1, 3, 1, 1)) / std.reshape(1, 3, 1, 1)
    assert jnp.allclose(out2, ref2, rtol=1e-5, atol=1e-5)

    print("KERNEL_OK")
</pallas_src>

<mosaic_0001>
module attributes {stable_mosaic.version = 11 : i64} {
  func.func @normalize_kernel(%arg0: i32, %arg1: memref<6x1xf32, #tpu.memory_space<vmem>>, %arg2: memref<6x1xf32, #tpu.memory_space<vmem>>, %arg3: memref<6x256xf32, #tpu.memory_space<vmem>>, %arg4: memref<6x256xf32, #tpu.memory_space<vmem>>) attributes {dimension_semantics = [#tpu.dimension_semantics<parallel>], iteration_bounds = array<i64: 1>, scalar_prefetch = 0 : i64, scratch_operands = 0 : i64, tpu.core_type = #tpu.core_type<tc>, window_params = [{pipeline_mode = #tpu.pipeline_mode<synchronous>, transform_indices = @transform_0, window_bounds = array<i64: 6, 1>}, {pipeline_mode = #tpu.pipeline_mode<synchronous>, transform_indices = @transform_1, window_bounds = array<i64: 6, 1>}, {transform_indices = @transform_2, window_bounds = array<i64: 6, 256>}, {transform_indices = @transform_3, window_bounds = array<i64: 6, 256>}]} {
    %c0 = arith.constant 0 : index
    %c0_0 = arith.constant 0 : index
    %0 = vector.load %arg3[%c0, %c0_0] : memref<6x256xf32, #tpu.memory_space<vmem>>, vector<6x256xf32>
    %c0_1 = arith.constant 0 : index
    %c0_2 = arith.constant 0 : index
    %1 = vector.load %arg1[%c0_1, %c0_2] : memref<6x1xf32, #tpu.memory_space<vmem>>, vector<6x1xf32>
    %2 = vector.broadcast %1 : vector<6x1xf32> to vector<6x256xf32>
    %3 = arith.mulf %0, %2 : vector<6x256xf32>
    %c0_3 = arith.constant 0 : index
    %c0_4 = arith.constant 0 : index
    %4 = vector.load %arg2[%c0_3, %c0_4] : memref<6x1xf32, #tpu.memory_space<vmem>>, vector<6x1xf32>
    %5 = vector.broadcast %4 : vector<6x1xf32> to vector<6x256xf32>
    %6 = arith.addf %3, %5 : vector<6x256xf32>
    %c0_5 = arith.constant 0 : index
    %c0_6 = arith.constant 0 : index
    %7 = vector.load %arg4[%c0_5, %c0_6] : memref<6x256xf32, #tpu.memory_space<vmem>>, vector<6x256xf32>
    tpu.vector_store %arg4[%c0_5, %c0_6], %6 {strides = array<i32>} : memref<6x256xf32, #tpu.memory_space<vmem>>, vector<6x256xf32>,
    return
  }
  func.func @transform_0(%arg0: i32) -> (i32, i32) {
    %c0_i32 = arith.constant 0 : i32
    %c0_i32_0 = arith.constant 0 : i32
    %c0_i32_1 = arith.constant 0 : i32
    return %c0_i32, %c0_i32_0 : i32, i32
  }
  func.func @transform_1(%arg0: i32) -> (i32, i32) {
    %c0_i32 = arith.constant 0 : i32
    %c0_i32_0 = arith.constant 0 : i32
    %c0_i32_1 = arith.constant 0 : i32
    return %c0_i32, %c0_i32_0 : i32, i32
  }
  func.func @transform_2(%arg0: i32) -> (i32, i32) {
    %c0_i32 = arith.constant 0 : i32
    %c0_i32_0 = arith.constant 0 : i32
    return %arg0, %c0_i32 : i32, i32
  }
  func.func @transform_3(%arg0: i32) -> (i32, i32) {
    %c0_i32 = arith.constant 0 : i32
    %c0_i32_0 = arith.constant 0 : i32
    return %arg0, %c0_i32 : i32, i32
  }
}

</mosaic_0001>

<bundles_post_ra>
// kernel: tile.0
= control target key start
LH: loop header
LB: loop body
LE: loop exit
PB: predicated region body
PF: predicated region fallthrough
CT: control target
= control target key end

     0   :  { %vm8_vm0 = vcmask 7168   ;;  %s27_s10 = smov 126   ;;  %s50_s0 = inlined_call_operand.vmem [shape: f32[2,3], index: 0, kind: input, shape index: {}]   ;;  %s51_s1 = inlined_call_operand.vmem [shape: f32[6,1], index: 1, kind: output, shape index: {}]  }
   0x1   :  { %v5_v0 = vld [vmem:[%s50_s0] sm:$0x3]  ;;  %s26_s0 = smov 127  }
   0x2   :  { %6 = vst [vmem:[#allocation0] sm:$0x3] %v5_v0 }
   0x9   :  { %v10_v1 = vld [vmem:[#allocation0] sm:$0x3]  }
   0xa   :  { %v7_v2 = vld [vmem:[#allocation0] sm:$0x3]   ;;  %11 = vrot.lane.b32.xlu0 %v10_v1, %s26_s0 }
   0xb   :  { %9 = vst.msk [vmem:[%s51_s1] ss:$3 sm:$0x3] %vm8_vm0, %v7_v2   ;;  %v16_v3 = vld [vmem:[#allocation0] sm:$0x3]  }
   0xe   :  { %17 = vrot.lane.b32.xlu0 %v16_v3, %s27_s10 }
  0x7c   :  { %v12_v4 = vpop.permute.xlu0 %11  }
  0x7d   :  { %22 = vst.msk [vmem:[%s51_s1 + $0x1] ss:$3 sm:$0x3] %vm8_vm0, %v12_v4  }
  0x80   :  { %v18_v5 = vpop.permute.xlu0 %17  }
  0x81   :  { %23 = vst.msk [vmem:[%s51_s1 + $0x2] ss:$3 sm:$0x3] %vm8_vm0, %v18_v5  }

// kernel: tile.18
= control target key start
LH: loop header
LB: loop body
LE: loop exit
PB: predicated region body
PF: predicated region fallthrough
CT: control target
= control target key end

     0   :  { %s22_s0 = inlined_call_operand.vmem [shape: f32[3], index: 0, kind: input, shape index: {}]   ;;  %s23_s1 = inlined_call_operand.vmem [shape: f32[2,3], index: 1, kind: output, shape index: {}]  }
   0x1   :  { %v4_v0 = vld [vmem:[%s22_s0] ss:$0 sm:$0xff] }
   0x2   :  { %5 = vst [vmem:[%s23_s1] sm:$0x3] %v4_v0 }

// kernel: normalize.1
= control target key start
LH: loop header
LB: loop body
LE: loop exit
PB: predicated region body
PF: predicated region fallthrough
CT: control target
= control target key end

     0   :  { %v40_v0 = vmov 0   ;;  %s79_s0 = inlined_call_operand.vmem [shape: f32[6,1], index: 0, kind: input, shape index: {}]   ;;  %s80_s1 = inlined_call_operand.vmem [shape: f32[6,1], index: 1, kind: input, shape index: {}]   ;;  %s81_s2 = inlined_call_operand.vmem [shape: f32[6,256], index: 2, kind: input, shape index: {}]   ;;  %s82_s3 = inlined_call_operand.vmem [shape: f32[6,256], index: 3, kind: output, shape index: {}]  }
   0x1   :  { %39 = vset.pattern.permute.xlu0 %v40_v0  ;;  %v16_v1 = vld [vmem:[%s79_s0] sm:$0x3f]  ;;  %v15_v4 = vld [vmem:[%s81_s2 + $0x8] sm:$0x3f] }
   0x2   :  { %19 = vperm.xlu0 %39, %v16_v1   ;;  %v24_v2 = vld [vmem:[%s80_s1] sm:$0x3f] }
   0x3   :  { %v14_v3 = vld [vmem:[%s81_s2] sm:$0x3f] }
   0x6   :  { %27 = vperm.xlu0 %39, %v24_v2  }
  0x7d   :  { %v20_v5 = vpop.permute.xlu0 %19 }
  0x7e   :  { %v22_v6 = vmul.f32 %v20_v5, %v14_v3  ;;  %v23_v7 = vmul.f32 %v20_v5, %v15_v4 }
  0x81   :  { %v28_v8 = vpop.permute.xlu0 %27 }
  0x82   :  { %v30_v9 = vadd.f32 %v28_v8, %v22_v6  ;;  %v31_v10 = vadd.f32 %v28_v8, %v23_v7 }
  0x84   :  { %32 = vst [vmem:[%s82_s3] sm:$0x3f] %v30_v9  ;;  %33 = vst [vmem:[%s82_s3 + $0x8] sm:$0x3f] %v31_v10 }

</bundles_post_ra>
